<compile_context>
chip_gen: v5e
topology: v5e:2x2
jax: 0.10.0
libtpu: 0.0.40
codegen_flags: <defaults>
</compile_context>

<pallas_src>
import jax
import jax.numpy as jnp
from jax.experimental import pallas as pl
from jax.experimental.pallas import tpu as pltpu

_LANE = 128
_MIN_GRID_STEPS = 8                    # >= ~4 per TensorCore on v7x + pipeline overlap
_MIN_SPLIT_BLOCK_BYTES = 512 * 1024    # don't split below this per-step block size
_VMEM_MARGIN = 4 * 1024 * 1024


def _round_up(v, m):
    return ((v + m - 1) // m) * m


def _cdiv(a, b):
    return -(-a // b)


def _sublane_pack(itemsize):
    # Sublane packing of a tile's second-minor dim: 8 (32-bit), 16 (16-bit), 32 (8-bit).
    return max(8, 32 // max(int(itemsize), 1))


def _divisors_desc(n):
    small, large = [], []
    d = 1
    while d * d <= n:
        if n % d == 0:
            small.append(d)
            if d != n // d:
                large.append(n // d)
        d += 1
    return sorted(small + large, reverse=True)


def _vmem_budgets():
    """(per-input-buffer tile budget, scoped vmem limit), generation aware."""
    vmem_cap = 128 * 1024 * 1024
    try:  # trace-time query; fall back to the 128-MiB (v5e/v6e) class if unavailable
        info = pltpu.get_tpu_info()
        vmem_cap = int(getattr(info, "vmem_capacity_bytes", vmem_cap))
    except Exception:
        pass
    if vmem_cap <= 80 * 1024 * 1024:
        # v7x-class: only 64 MiB VMEM per TensorCore but faster HBM -> ~12 MiB tiles.
        return 12 * 1024 * 1024, 44 * 1024 * 1024
    # v5e / v6e: 128 MiB VMEM; 16 MiB tiles keep the ~0.35us per-step overhead ~3%.
    return 16 * 1024 * 1024, 64 * 1024 * 1024


def _fold_schedule(L, W):
    """Lane-aligned halving schedule for reducing h-groups of width W in (ct, L).

    Returns ([L//2, L//4, ...], tail): fold widths while the h-group count stays
    even and the half stays a multiple of 128 lanes; `tail` is the remaining
    lane width (a small multiple of W) handled by W-wide slice adds.
    """
    folds, cur = [], L
    while cur > W:
        half = cur // 2
        if (cur // W) % 2 != 0 or half % _LANE != 0:
            break
        folds.append(half)
        cur = half
    return folds, cur


def _plan(N, C, H, W, itemsize):
    """Pick layout + tiling: (use_flat, ct, ht, vmem_limit_bytes).

    Grid is (N, cdiv(C, ct), H // ht); `use_flat` selects the lane-dense
    (N, C, H*W) layout used when W is not a multiple of 128.
    """
    pack = _sublane_pack(itemsize)
    budget, vmem_limit = _vmem_budgets()
    min_ct = C if C < pack else pack

    def in_block_bytes(use_flat, ct, ht):
        # Padded (sublane, lane) VMEM footprint of one input block.
        if use_flat:
            return _round_up(ct, pack) * _round_up(ht * W, _LANE) * itemsize
        return ct * _round_up(ht, pack) * _round_up(W, _LANE) * itemsize

    def total_vmem_bytes(use_flat, ct, ht):
        # Double-buffered input + double-buffered output + accumulator + fold tmp.
        out_blk = _round_up(ct, 8) * _round_up(W, _LANE) * 4
        tmp = 0
        if use_flat:
            folds, _ = _fold_schedule(ht * W, W)
            if folds:
                tmp = _round_up(ct, 8) * _round_up(folds[0], _LANE) * 4
        return 2 * in_block_bytes(use_flat, ct, ht) + 3 * out_blk + tmp

    def ht_valid(use_flat, ht):
        if ht == H:
            return True
        if H % ht != 0:
            return False
        if use_flat:
            return (ht * W) % _LANE == 0   # flat block's lane dim stays 128-aligned
        return ht % pack == 0              # 4d block's sublane dim stays packed

    def fits(use_flat, ct, ht):
        return (in_block_bytes(use_flat, ct, ht) <= budget
                and total_vmem_bytes(use_flat, ct, ht) <= vmem_limit - _VMEM_MARGIN)

    def try_layout(use_flat):
        # Largest valid H chunk whose minimum-channel block fits the budget.
        ht = None
        for cand in _divisors_desc(H):
            if ht_valid(use_flat, cand) and fits(use_flat, min_ct, cand):
                ht = cand
                break
        if ht is None:
            return None
        # Largest channel tile (multiple of the sublane pack, or all of C).
        if C <= pack:
            ct = C
        else:
            per_pack = in_block_bytes(use_flat, pack, ht)
            est = max(1, budget // per_pack) * pack
            ct = C if est >= C else est
            while ct > pack and not fits(use_flat, ct, ht):
                ct = ((ct - 1) // pack) * pack
            ct = max(ct, pack)
        # Enough grid steps for megacore sharding + pipeline overlap: shrink the
        # channel tile first, then split H further if still too few steps.
        n_h = H // ht
        want_cb = _cdiv(_MIN_GRID_STEPS, N * n_h)
        if want_cb > 1 and C > pack:
            ct_target = _round_up(_cdiv(C, want_cb), pack)
            ct = min(ct, max(pack, ct_target))
            if ct >= C:
                ct = C
        if N * _cdiv(C, ct) * n_h < _MIN_GRID_STEPS:
            cands = [d for d in _divisors_desc(H)
                     if d < ht and ht_valid(use_flat, d)
                     and in_block_bytes(use_flat, ct, d) >= _MIN_SPLIT_BLOCK_BYTES]
            chosen = None
            for cand in cands:             # descending: least splitting that reaches the floor
                if N * _cdiv(C, ct) * (H // cand) >= _MIN_GRID_STEPS:
                    chosen = cand
                    break
            if chosen is None and cands:
                chosen = cands[-1]         # otherwise: most steps we can afford
            if chosen is not None:
                ht = chosen
        return ct, ht

    use_flat = (W % _LANE != 0)
    plan = try_layout(use_flat)
    if plan is None and use_flat:
        use_flat = False                   # lane-padded but always expressible
        plan = try_layout(False)
    if plan is None:
        # TODO(synk): no divisor of H keeps even a pack-sized channel slab within
        # the VMEM budget (e.g. enormous W or awkward prime H); fall back to the
        # finest legal split and raise the scoped-VMEM limit instead of failing.
        ht = next((d for d in reversed(_divisors_desc(H)) if ht_valid(False, d)), H)
        plan = (min_ct, ht)
        vmem_limit = max(vmem_limit, total_vmem_bytes(False, min_ct, ht) + _VMEM_MARGIN)
    ct, ht = plan
    return use_flat, ct, ht, vmem_limit


def _make_kernel_4d(acc_dtype):
    """Reduce x_ref (ct, ht, W) over axis 1 into a resident accumulator."""

    def kernel(x_ref, o_ref, acc_ref):
        h = pl.program_id(2)

        @pl.when(h == 0)
        def _init():
            acc_ref[...] = jnp.zeros_like(acc_ref)

        # NOTE: dtype=acc_dtype keeps bf16/fp16 accumulation in f32; if profiling
        # shows a materialized full-tile upcast, switch to chunked sublane adds.
        acc_ref[...] += jnp.sum(x_ref[...], axis=1, dtype=acc_dtype)

        @pl.when(h == pl.num_programs(2) - 1)
        def _fin():
            o_ref[...] = acc_ref[...].astype(o_ref.dtype)

    return kernel


def _make_kernel_flat(W, folds, tail, acc_dtype):
    """Reduce lane-dense x_ref (ct, L) h-groups of width W into the accumulator.

    Static schedule: 128-aligned fold-by-halves (pure streaming VPU adds, dense
    loads/stores) down to `tail` lanes, then `tail // W` W-wide lane-slice adds
    (tiny per-row XLU cost).
    """
    groups = tail // W

    def _reduce(x_ref, tmp_ref):
        if folds:
            f0 = folds[0]
            tmp_ref[:, pl.ds(0, f0)] = (x_ref[:, pl.ds(0, f0)].astype(acc_dtype)
                                        + x_ref[:, pl.ds(f0, f0)].astype(acc_dtype))
            for f in folds[1:]:
                tmp_ref[:, pl.ds(0, f)] = (tmp_ref[:, pl.ds(0, f)]
                                           + tmp_ref[:, pl.ds(f, f)])
            read = lambda g: tmp_ref[:, pl.ds(g * W, W)]
        else:
            read = lambda g: x_ref[:, pl.ds(g * W, W)].astype(acc_dtype)
        part = read(0)
        for g in range(1, groups):
            part = part + read(g)
        return part

    def _body(x_ref, o_ref, acc_ref, tmp_ref):
        h = pl.program_id(2)

        @pl.when(h == 0)
        def _init():
            acc_ref[...] = jnp.zeros_like(acc_ref)

        acc_ref[...] += _reduce(x_ref, tmp_ref)

        @pl.when(h == pl.num_programs(2) - 1)
        def _fin():
            o_ref[...] = acc_ref[...].astype(o_ref.dtype)

    if folds:
        return _body

    def kernel(x_ref, o_ref, acc_ref):
        _body(x_ref, o_ref, acc_ref, None)

    return kernel


def dconv_menb_forward(x: jax.Array) -> jax.Array:
    """Equivalent of DConvMenb().forward(x) == torch.sum(x, 2) for NCHW input."""
    N, C, H, W = x.shape

    if jnp.issubdtype(x.dtype, jnp.floating):
        acc_dtype = jnp.float32            # f32 accumulation for bf16/fp16 safety
        out_dtype = x.dtype
    else:
        # torch.sum promotes bool/integral inputs to int64; TPU compute is 32-bit.
        # TODO(synk): cast to int64 outside the kernel if exact dtype parity with
        # torch is required (needs jax_enable_x64).
        acc_dtype = (jnp.uint32 if jnp.issubdtype(x.dtype, jnp.unsignedinteger)
                     else jnp.int32)
        out_dtype = acc_dtype

    use_flat, ct, ht, vmem_limit = _plan(N, C, H, W, x.dtype.itemsize)
    grid = (N, _cdiv(C, ct), H // ht)

    scratch = [pltpu.VMEM((ct, W), acc_dtype)]       # resident H-accumulator
    if use_flat:
        L = ht * W
        folds, tail = _fold_schedule(L, W)
        if folds:
            scratch.append(pltpu.VMEM((ct, folds[0]), acc_dtype))
        kernel = _make_kernel_flat(W, folds, tail, acc_dtype)
        x_in = x.reshape(N, C, H * W)                # free (contiguous); lane-dense blocks
        in_spec = pl.BlockSpec((None, ct, L), lambda n, c, h: (n, c, h))
    else:
        kernel = _make_kernel_4d(acc_dtype)
        x_in = x
        in_spec = pl.BlockSpec((None, ct, ht, W), lambda n, c, h: (n, c, h, 0))

    return pl.pallas_call(
        kernel,
        out_shape=jax.ShapeDtypeStruct((N, C, W), out_dtype),
        grid_spec=pltpu.PrefetchScalarGridSpec(
            num_scalar_prefetch=0,
            grid=grid,
            in_specs=[in_spec],
            # Output block stays resident across the h (reduction) axis; its
            # traffic is 1/H of the input, so the W<128 masked stores are cheap.
            out_specs=pl.BlockSpec((None, ct, W), lambda n, c, h: (n, c, 0)),
            scratch_shapes=scratch,
        ),
        compiler_params=pltpu.CompilerParams(
            # N and C axes shard across TensorCores; the H axis is a reduction.
            dimension_semantics=("parallel", "parallel", "arbitrary"),
            vmem_limit_bytes=vmem_limit,
        ),
    )(x_in)


if __name__ == "__main__":
    key = jax.random.PRNGKey(0)
    k1, k2 = jax.random.split(key)

    # Small NCHW input consistent with the module's conv-style usage.
    # Exercises the lane-dense (W % 128 != 0) path.
    x = jax.random.normal(k1, (2, 4, 16, 16), dtype=jnp.float32)
    out = jax.block_until_ready(dconv_menb_forward(x))
    ref = jnp.sum(x, axis=2)
    assert out.shape == ref.shape == (2, 4, 16)
    assert jnp.allclose(out, ref, atol=1e-5, rtol=1e-5)

    # Lane-aligned path (W a multiple of 128) sanity check.
    x2 = jax.random.normal(k2, (2, 4, 16, 128), dtype=jnp.float32)
    out2 = jax.block_until_ready(dconv_menb_forward(x2))
    ref2 = jnp.sum(x2, axis=2)
    assert out2.shape == ref2.shape == (2, 4, 128)
    assert jnp.allclose(out2, ref2, atol=1e-5, rtol=1e-5)

    print("KERNEL_OK")
</pallas_src>

<mosaic_0001>
module attributes {stable_mosaic.version = 11 : i64} {
  func.func @_body(%arg0: i32, %arg1: i32, %arg2: i32, %arg3: memref<1x4x256xf32, #tpu.memory_space<vmem>>, %arg4: memref<1x4x16xf32, #tpu.memory_space<vmem>>, %arg5: memref<4x16xf32, #tpu.memory_space<vmem>>, %arg6: memref<4x128xf32, #tpu.memory_space<vmem>>) attributes {dimension_semantics = [#tpu.dimension_semantics<parallel>, #tpu.dimension_semantics<parallel>, #tpu.dimension_semantics<arbitrary>], iteration_bounds = array<i64: 2, 1, 1>, scalar_prefetch = 0 : i64, scratch_operands = 2 : i64, tpu.core_type = #tpu.core_type<tc>, window_params = [{transform_indices = @transform_0, window_bounds = array<i64: 1, 4, 256>}, {transform_indices = @transform_1, window_bounds = array<i64: 1, 4, 16>}]} {
    %c0_i32 = arith.constant 0 : i32
    %0 = arith.cmpi eq, %arg2, %c0_i32 : i32
    %1 = arith.extui %0 : i1 to i32
    %c0_i32_0 = arith.constant 0 : i32
    %2 = arith.cmpi ne, %1, %c0_i32_0 : i32
    scf.if %2 {
      %cst = arith.constant 0.000000e+00 : f32
      %30 = vector.broadcast %cst : f32 to vector<4x16xf32>
      %c0_22 = arith.constant 0 : index
      %c0_23 = arith.constant 0 : index
      %31 = vector.load %arg5[%c0_22, %c0_23] : memref<4x16xf32, #tpu.memory_space<vmem>>, vector<4x16xf32>
      tpu.vector_store %arg5[%c0_22, %c0_23], %30 {strides = array<i32>} : memref<4x16xf32, #tpu.memory_space<vmem>>, vector<4x16xf32>,
    } else {
    }
    %c0 = arith.constant 0 : index
    %c0_1 = arith.constant 0 : index
    %3 = vector.load %arg5[%c0, %c0_1] : memref<4x16xf32, #tpu.memory_space<vmem>>, vector<4x16xf32>
    %c0_2 = arith.constant 0 : index
    %c0_3 = arith.constant 0 : index
    %c0_4 = arith.constant 0 : index
    %4 = vector.load %arg3[%c0_2, %c0_3, %c0_4] : memref<1x4x256xf32, #tpu.memory_space<vmem>>, vector<1x4x128xf32>
    %5 = vector.shape_cast %4 : vector<1x4x128xf32> to vector<4x128xf32>
    %c0_5 = arith.constant 0 : index
    %c0_6 = arith.constant 0 : index
    %c128 = arith.constant 128 : index
    %6 = vector.load %arg3[%c0_5, %c0_6, %c128] : memref<1x4x256xf32, #tpu.memory_space<vmem>>, vector<1x4x128xf32>
    %7 = vector.shape_cast %6 : vector<1x4x128xf32> to vector<4x128xf32>
    %8 = arith.addf %5, %7 : vector<4x128xf32>
    %c0_7 = arith.constant 0 : index
    %c0_8 = arith.constant 0 : index
    %9 = vector.load %arg6[%c0_7, %c0_8] : memref<4x128xf32, #tpu.memory_space<vmem>>, vector<4x128xf32>
    tpu.vector_store %arg6[%c0_7, %c0_8], %8 {strides = array<i32>} : memref<4x128xf32, #tpu.memory_space<vmem>>, vector<4x128xf32>,
    %c0_9 = arith.constant 0 : index
    %c0_10 = arith.constant 0 : index
    %10 = vector.load %arg6[%c0_9, %c0_10] : memref<4x128xf32, #tpu.memory_space<vmem>>, vector<4x16xf32>
    %c0_11 = arith.constant 0 : index
    %c16 = arith.constant 16 : index
    %11 = vector.load %arg6[%c0_11, %c16] : memref<4x128xf32, #tpu.memory_space<vmem>>, vector<4x16xf32>
    %12 = arith.addf %10, %11 : vector<4x16xf32>
    %c0_12 = arith.constant 0 : index
    %c32 = arith.constant 32 : index
    %13 = vector.load %arg6[%c0_12, %c32] : memref<4x128xf32, #tpu.memory_space<vmem>>, vector<4x16xf32>
    %14 = arith.addf %12, %13 : vector<4x16xf32>
    %c0_13 = arith.constant 0 : index
    %c48 = arith.constant 48 : index
    %15 = vector.load %arg6[%c0_13, %c48] : memref<4x128xf32, #tpu.memory_space<vmem>>, vector<4x16xf32>
    %16 = arith.addf %14, %15 : vector<4x16xf32>
    %c0_14 = arith.constant 0 : index
    %c64 = arith.constant 64 : index
    %17 = vector.load %arg6[%c0_14, %c64] : memref<4x128xf32, #tpu.memory_space<vmem>>, vector<4x16xf32>
    %18 = arith.addf %16, %17 : vector<4x16xf32>
    %c0_15 = arith.constant 0 : index
    %c80 = arith.constant 80 : index
    %19 = vector.load %arg6[%c0_15, %c80] : memref<4x128xf32, #tpu.memory_space<vmem>>, vector<4x16xf32>
    %20 = arith.addf %18, %19 : vector<4x16xf32>
    %c0_16 = arith.constant 0 : index
    %c96 = arith.constant 96 : index
    %21 = vector.load %arg6[%c0_16, %c96] : memref<4x128xf32, #tpu.memory_space<vmem>>, vector<4x16xf32>
    %22 = arith.addf %20, %21 : vector<4x16xf32>
    %c0_17 = arith.constant 0 : index
    %c112 = arith.constant 112 : index
    %23 = vector.load %arg6[%c0_17, %c112] : memref<4x128xf32, #tpu.memory_space<vmem>>, vector<4x16xf32>
    %24 = arith.addf %22, %23 : vector<4x16xf32>
    %25 = arith.addf %3, %24 : vector<4x16xf32>
    %c0_18 = arith.constant 0 : index
    %c0_19 = arith.constant 0 : index
    %26 = vector.load %arg5[%c0_18, %c0_19] : memref<4x16xf32, #tpu.memory_space<vmem>>, vector<4x16xf32>
    tpu.vector_store %arg5[%c0_18, %c0_19], %25 {strides = array<i32>} : memref<4x16xf32, #tpu.memory_space<vmem>>, vector<4x16xf32>,
    %c0_i32_20 = arith.constant 0 : i32
    %27 = arith.cmpi eq, %arg2, %c0_i32_20 : i32
    %28 = arith.extui %27 : i1 to i32
    %c0_i32_21 = arith.constant 0 : i32
    %29 = arith.cmpi ne, %28, %c0_i32_21 : i32
    scf.if %29 {
      %c0_22 = arith.constant 0 : index
      %c0_23 = arith.constant 0 : index
      %30 = vector.load %arg5[%c0_22, %c0_23] : memref<4x16xf32, #tpu.memory_space<vmem>>, vector<4x16xf32>
      %c0_24 = arith.constant 0 : index
      %c0_25 = arith.constant 0 : index
      %c0_26 = arith.constant 0 : index
      %31 = vector.load %arg4[%c0_24, %c0_25, %c0_26] : memref<1x4x16xf32, #tpu.memory_space<vmem>>, vector<1x4x16xf32>
      %32 = vector.shape_cast %31 : vector<1x4x16xf32> to vector<4x16xf32>
      %33 = vector.shape_cast %30 : vector<4x16xf32> to vector<1x4x16xf32>
      tpu.vector_store %arg4[%c0_24, %c0_25, %c0_26], %33 {strides = array<i32>} : memref<1x4x16xf32, #tpu.memory_space<vmem>>, vector<1x4x16xf32>,
    } else {
    }
    return
  }
  func.func @transform_0(%arg0: i32, %arg1: i32, %arg2: i32) -> (i32, i32, i32) {
    %c0_i32 = arith.constant 0 : i32
    return %arg0, %arg1, %arg2 : i32, i32, i32
  }
  func.func @transform_1(%arg0: i32, %arg1: i32, %arg2: i32) -> (i32, i32, i32) {
    %c0_i32 = arith.constant 0 : i32
    %c0_i32_0 = arith.constant 0 : i32
    return %arg0, %arg1, %c0_i32 : i32, i32, i32
  }
}

</mosaic_0001>

<bundles_post_ra>
// kernel: tpu_custom_call.1
= control target key start
LH: loop header
LB: loop body
LE: loop exit
PB: predicated region body
PF: predicated region fallthrough
CT: control target
= control target key end

     0   :  { %6 = vsyncpa [#allocation5], 0  ;;  %s659_s0 = inlined_call_operand.hbm [shape: f32[2,4,256], index: 0, kind: input, shape index: {}]   ;;  %s660_s1 = inlined_call_operand.hbm [shape: f32[2,4,16], index: 1, kind: output, shape index: {}]  }
   0x1   :  { %8 = vsyncpa [#allocation5 + $0x1], 0 }
   0x2   :  { %9 = vsyncpa [#allocation6], 0 }
   0x3   :  { %11 = vsyncpa [#allocation6 + $0x1], 0  ;;  %s535_s6 = smov 0   ;;  %s537_s7 = smov 0  }
   0x4   :  { %s539_s8 = smov 0   ;;  %s541_s9 = smov 0  }
   0x5   :  { %s543_s10 = smov 0   ;;  %s545_s11 = smov 0  }
   0x6 LB: > { %s318_s12 = sadd.s32 4294967295, %s515_s11   ;;  %s319_s13 = sadd.s32 4294967294, %s515_s11   ;;  %s515_s11 = sphi %s545_s11, %s17_s11   ;;  %s511_s10 = sphi %s543_s10, %s669_s10   ;;  %s507_s9 = sphi %s541_s9, %s668_s9   ;;  %s503_s8 = sphi %s539_s8, %s667_s8   ;;  %s499_s7 = sphi %s537_s7, %s666_s7   ;;  %s495_s6 = sphi %s535_s6, %s665_s6  }
   0x7   : > { %s36_s14 = sadd.s32 1, %s511_s10  ;;  %s47_s15 = sadd.s32 1, %s503_s8 }
   0x8   : > { %p38_p0 = scmp.ge.s32.totalorder %s36_s14, 2  ;;  %p54_p1 = scmp.ne.s32.totalorder %s503_s8, %s499_s7 }
   0x9   : > { %p55_p2 = scmp.eq.s32.totalorder %s515_s11, 0  ;;  %p60_p3 = scmp.ne.s32.totalorder %s499_s7, %s495_s6 }
   0xa   : > { %s671_s14 = smov (%p38_p0, %s36_s14), 0  ;;  %p61_p5 = scmp.eq.s32.totalorder %s318_s12, 0 }
   0xb   : > { %p576_p4 = por %p55_p2, %p54_p1  ;;  %s40_s17 = ssub.s32 %s511_s10, %s671_s14 }
   0xc   : > { %p86_p6 = scmp.eq.s32.totalorder %s318_s12, 1  ;;  %p45_p7 = scmp.eq.s32.totalorder %s40_s17, 0 }
   0xd   : > { %p582_p8 = por %p61_p5, %p60_p3  ;;  %p92_p10 = scmp.eq.s32.totalorder %s319_s13, 1 }
   0xe   : > { %p586_p9 = por %p86_p6, %p54_p1  ;;  %p321_p12 = scmp.ge.s32.totalorder %s515_s11, 2 }
   0xf   : > { %s591_s20 = scalar_select %p45_p7, %s503_s8, %s47_s15  }
  0x10   : > { %p593_p11 = por %p92_p10, %p60_p3  ;;  %p345_p13 = scmp.lt.s32.totalorder %s515_s11, 2 }
  0x11   : > { %s112_s22 = sand.u32 1, %s503_s8   ;;  %s332_s24 = sshll.u32 %s511_s10, 3 }
  0x12   : > { %s322_s23 = sshll.u32 %s112_s22, 3  ;;  %s125_s27 = scalar_lea.hbm %s659_s0, %s332_s24 }
  0x13   : > { %s116_s28 = scalar_lea.vmem [#allocation4], %s322_s23  ;;  %s127_s30 = sshll.u32 %s125_s27, 4  ;;  %s128_s30 = int_to_ptr.hbm [resolvable:$true] %s127_s30 }
  0x14   : > { %s129_s29 = sshll.u32 %s116_s28, 4  ;;  %p338_p0 = pnand %p345_p13, %p576_p4  ;;  %s130_s29 = int_to_ptr.vmem [resolvable:$true] %s129_s29 }
  0x15   : > { %p325_p1 = scmp.ge.s32.totalorder %s515_s11, 1  ;;  %p134_p2 = scmp.lt.s32.totalorder %s515_s11, 3 }
  0x16   : > { %s113_s2 = scalar_lea.sflag [#allocation5], %s112_s22 }
  0x17   : > { %340 = dma.hbm_to_vmem [thread:$0]  (!%p338_p0), %s128_s30, 128, %s130_s29, %s113_s2  }
  0x18   : > { %p135_p3 = pnand %p325_p1, %p134_p2 }
  0x19   : > { %s609_s3 = sand.u32 (!%p135_p3), 1, %s499_s7  }
  0x1a   : > { %138 = sbr.rel (%p135_p3) target bundleno = 191 (0xbf), region = 24  ;;  %s326_s4 = sshll.u32 (!%p135_p3), %s609_s3, 3 }
  0x1b   : > { %s141_s5 = scalar_lea.sflag (!%p135_p3), [#allocation5], %s609_s3  ;;  %s144_s12 = scalar_lea.vmem (!%p135_p3), [#allocation4], %s326_s4 }
  0x1f   : > { %486 = dma.done.wait (%p582_p8), %s141_s5, 128  }
  0x20   : > { %488 = vsyncadd (%p582_p8), %s141_s5, 4294967168  ;;  %v172_v0 = vld [vmem:[%s144_s12] sm:$0xf]  ;;  %v173_v1 = vld [vmem:[%s144_s12 + $0x4] sm:$0xf]  ;;  %s517_s13 = smov 112  }
  0x21   : > { %v174_v2 = vadd.f32 %v173_v1, %v172_v0  ;;  %s518_s15 = smov 80   ;;  %s519_s16 = smov 48   ;;  %vm169_vm0 = vcmask 125952   ;;  %v524_v4 = vmov 0.0  }
  0x22   : > { %s520_s17 = smov 96   ;;  %s521_s22 = smov 64   ;;  %170 = vst.msk [vmem:[#allocation2] sm:$0xf] %vm169_vm0, %v524_v4 }
  0x23   : > { %175 = vst [vmem:[#allocation3] sm:$0xf] %v174_v2  ;;  %s522_s23 = smov 32   ;;  %s523_s24 = smov 16  }
  0x24   : > { %s327_s18 = sshll.u32 %s609_s3, 2  ;;  %s329_s25 = sshll.u32 %s507_s9, 2 }
  0x25   : > { %s226_s28 = scalar_lea.hbm %s660_s1, %s329_s25  ;;  %s163_s29 = scalar_lea.vmem [#allocation7], %s327_s18 }
  0x26   : > { %s228_s30 = sshll.u32 %s163_s29, 4  ;;  %s230_s2 = sshll.u32 %s226_s28, 4  ;;  %s229_s30 = int_to_ptr.vmem [resolvable:$true] %s228_s30  ;;  %s231_s2 = int_to_ptr.hbm [resolvable:$true] %s230_s2 }
  0x27   : > { %s215_s4 = scalar_lea.sflag [#allocation6], %s609_s3  ;;  %s447_s5 = sshra.s32 %s231_s2, 4  ;;  %s448_s5 = int_to_ptr.hbm [resolvable:$true] %s447_s5 }
  0x28   : > { %s449_s9 = scalar_lea.hbm %s448_s5, 4  ;;  %p454_p7 = scmp.lt.s32.totalorder %s448_s5, %s660_s1 }
  0x29   : > { %v171_v18 = vld [vmem:[#allocation2] sm:$0xf]  ;;  %p450_p4 = scmp.ne.s32.totalorder %s448_s5, %s449_s9 }
  0x2a   : > { %v176_v3 = vld [vmem:[#allocation3] sm:$0xf] }
  0x2b   : > { %178 = vrot.lane.b32.xlu0 %v176_v3, %s517_s13  ;;  %186 = vrot.lane.b32.xlu1 %v176_v3, %s518_s15  ;;  %p451_p5 = pnand %p450_p4, %p586_p9  ;;  %s453_s15 = scalar_lea.hbm %s660_s1, 8 }
  0x2c   : > { %194 = vrot.lane.b32.xlu2 %v176_v3, %s519_s16  ;;  %p455_p8 = scmp.lt.s32.totalorder %s453_s15, %s449_s9 }
  0x2d   : > { %p452_p6 = pneg %p451_p5 }
  0x2e   : > { %p456_p10 = por %p455_p8, %p454_p7 }
  0x30   : > { %p457_p13 = pnand %p456_p10, %p452_p6 }
  0x33   : > { %182 = vrot.lane.b32.xlu0 %v176_v3, %s520_s17  ;;  %190 = vrot.lane.b32.xlu1 %v176_v3, %s521_s22 }
  0x34   : > { %198 = vrot.lane.b32.xlu2 %v176_v3, %s522_s23 }
  0x3b   : > { %202 = vrot.lane.b32.xlu0 %v176_v3, %s523_s24 }
  0x86   : > { %v195_v7 = vpop.permute.xlu2 %194 }
  0x8e   : > { %v199_v14 = vpop.permute.xlu2 %198 }
  0x9d   : > { %v179_v5 = vpop.permute.xlu0 %178  ;;  %v187_v6 = vpop.permute.xlu1 %186 }
  0x9e   : > { %v181_v8 = vadd.f32 %v179_v5, %v176_v3 }
  0xa5   : > { %v183_v9 = vpop.permute.xlu0 %182  ;;  %v191_v11 = vpop.permute.xlu1 %190 }
  0xa6   : > { %v185_v10 = vadd.f32 %v183_v9, %v181_v8 }
  0xa8   : > { %v189_v12 = vadd.f32 %v187_v6, %v185_v10 }
  0xaa   : > { %v193_v13 = vadd.f32 %v191_v11, %v189_v12 }
  0xac   : > { %v197_v15 = vadd.f32 %v195_v7, %v193_v13 }
  0xad   : > { %v203_v16 = vpop.permute.xlu0 %202 }
  0xae   : > { %v201_v17 = vadd.f32 %v199_v14, %v197_v15 }
  0xb0   : > { %v205_v19 = vadd.f32 %v203_v16, %v201_v17 }
  0xb2   : > { %v206_v20 = vadd.f32 %v205_v19, %v171_v18 }
  0xb4   : > { %208 = vst.msk [vmem:[#allocation2] sm:$0xf] %vm169_vm0, %v206_v20 }
  0xbb   : > { %v212_v21 = vld [vmem:[#allocation2] sm:$0xf] }
  0xbc   : > { %213 = vst.msk [vmem:[%s163_s29] sm:$0xf] %vm169_vm0, %v212_v21 }
  0xbd   : > { %460 = shalt.err (!%p457_p13)
}
  0xbe   : > { %335 = dma.vmem_to_hbm [thread:$0]  (%p586_p9), %s229_s30, 64, %s231_s2, %s215_s4  }
  0xbf PF: > { %s242_s3 = sand.u32 1, %s495_s6   ;;  %p342_p0 = pnand %p321_p12, %p593_p11 }
  0xc0   : > { %s243_s22 = scalar_lea.sflag [#allocation6], %s242_s3 }
  0xc1   : > { %p343_p1 = pneg %p342_p0 }
  0xc3   : > { %490 = dma.done.wait (%p343_p1), %s243_s22, 64  }
  0xc4   : > { %492 = vsyncadd (%p343_p1), %s243_s22, 4294967232  ;;  %s17_s11 = sadd.s32 1, %s515_s11   ;;  %s665_s6 = smov %s499_s7 }
  0xc5   : > { %p14_p2 = scmp.ge.s32.totalorder %s17_s11, 4   ;;  %s666_s7 = smov %s503_s8 }
  0xc6   : > { %s667_s8 = smov %s591_s20  ;;  %s668_s9 = smov %s511_s10 }
  0xc7   : > { %s669_s10 = smov %s671_s14  ;;  %16 = sbr.rel (!%p14_p2) target bundleno = 6 (0x6), region = 77 }
  0xcc   :  { %249 = vsyncpa [#allocation5], 1 }
  0xcd   :  { %251 = vsyncpa [#allocation5 + $0x1], 1 }
  0xce   :  { %252 = vsyncpa [#allocation6], 1 }
  0xcf   :  { %254 = vsyncpa [#allocation6 + $0x1], 1 }

</bundles_post_ra>
